<compile_context>
chip_gen: v7x
topology: tpu7x:2x2x1
jax: 0.10.0
libtpu: 0.0.40
codegen_flags: <defaults>
</compile_context>

<pallas_src>
import functools

import jax
import jax.numpy as jnp
from jax.experimental import pallas as pl
from jax.experimental.pallas import tpu as pltpu

PI = 3.1415926535  # matches the constant hard-coded in the PyTorch module

_VMEM_LIMIT = 32 * 1024 * 1024        # >= per-generation needs, <= v7x physical
_BLOCK_TARGET_BYTES = 6 * 1024 * 1024  # per input block (~12 MiB double-buffered)


def _round_up(x, m):
    return ((x + m - 1) // m) * m


def _acos(x):
    """arccos on [-1, 1] via the Abramowitz & Stegun 4.4.46 polynomial.

    |error| < 2e-8; uses only mul/add/sqrt/abs/select so it lowers on all TPU
    generations (no dependence on a lax.acos / atan2 Mosaic lowering rule).
    """
    a = jnp.abs(x)
    p = jnp.float32(-0.0012624911)
    p = p * a + 0.0066700901
    p = p * a - 0.0170881256
    p = p * a + 0.0308918810
    p = p * a - 0.0501743046
    p = p * a + 0.0889789874
    p = p * a - 0.2145988016
    p = p * a + 1.5707963050
    r = p * jnp.sqrt(jnp.maximum(1.0 - a, 0.0))
    return jnp.where(x < 0.0, PI - r, r)


# ----------------------------------------------------------------------------
# Kernel 1: mean cross entropy over (N, C) logits with integer targets.
#   grid = (2, blocks_per_part): leading "parallel" axis splits the batch over
#   both v7x TensorCores; inner "arbitrary" axis accumulates into a per-part
#   (1,1,1) output.  No wrapper-side padding: edge blocks are masked by a
#   select on the logical row index.
# ----------------------------------------------------------------------------
def _ce_kernel(logits_ref, tgt_ref, out_ref, *, n_rows, block_n, blocks_per_part):
    part = pl.program_id(0)
    step = pl.program_id(1)

    @pl.when(step == 0)
    def _init():
        out_ref[...] = jnp.zeros_like(out_ref)

    logits = logits_ref[...].astype(jnp.float32)                  # (bn, C)
    tgt = tgt_ref[...]                                            # (bn, 1) int32

    cols = jax.lax.broadcasted_iota(jnp.int32, logits.shape, 1)
    onehot = cols == tgt

    m = jnp.max(logits, axis=1, keepdims=True)                    # (bn, 1)
    z = logits - m
    lse = jnp.log(jnp.sum(jnp.exp(z), axis=1, keepdims=True))     # (bn, 1)
    picked_z = jnp.sum(jnp.where(onehot, z, 0.0), axis=1, keepdims=True)
    row_loss = lse - picked_z                                     # (bn, 1)

    # Mask rows past the real batch (edge / fully-out-of-range blocks).  Must
    # be a select so Inf/NaN from garbage rows cannot leak into the sum.
    row0 = (part * blocks_per_part + step) * block_n
    rows = row0 + jax.lax.broadcasted_iota(jnp.int32, row_loss.shape, 0)
    row_loss = jnp.where(rows < n_rows, row_loss, 0.0)

    out_ref[0] += jnp.sum(row_loss, axis=0, keepdims=True)        # (1, 1)

    @pl.when(step == pl.num_programs(1) - 1)
    def _finalize():
        out_ref[...] = out_ref[...] / jnp.float32(n_rows)


def cross_entropy_pallas(logits, target):
    n, c = logits.shape

    # Adaptive row block: ~6 MiB logits tile (x2 buffers ~12 MiB), floor 8 rows.
    bn = _BLOCK_TARGET_BYTES // max(c * 4, 1)
    bn = max(8, min(bn, 2048))
    bn = _round_up(min(bn, max(n, 1)), 8)

    total_blocks = pl.cdiv(n, bn)
    blocks_per_part = pl.cdiv(total_blocks, 2)     # 2-way split for v7x megacore

    tgt2 = target.reshape(n, 1).astype(jnp.int32)

    def in_map(p, i):
        # Clamp so a fully-out-of-range block (possible for the second part)
        # re-reads a valid block; its rows are masked in-kernel anyway.
        return (jnp.minimum(p * blocks_per_part + i, total_blocks - 1), 0)

    out = pl.pallas_call(
        functools.partial(_ce_kernel, n_rows=n, block_n=bn,
                          blocks_per_part=blocks_per_part),
        out_shape=jax.ShapeDtypeStruct((2, 1, 1), jnp.float32),
        grid=(2, blocks_per_part),
        in_specs=[pl.BlockSpec((bn, c), in_map),
                  pl.BlockSpec((bn, 1), in_map)],
        out_specs=pl.BlockSpec((1, 1, 1), lambda p, i: (p, 0, 0)),
        compiler_params=pltpu.CompilerParams(
            dimension_semantics=("parallel", "arbitrary"),
            vmem_limit_bytes=_VMEM_LIMIT),
    )(logits, tgt2)
    return jnp.sum(out)                                            # mean CE


# ----------------------------------------------------------------------------
# Kernel 2: per-layer conv angle regularizer (fused arccos + sum).
#   Input layout: (L, I, KH*KW, O) -- O on the 128-lane axis (lane dense).
#   Grid: (L "parallel", I-blocks "arbitrary") with VMEM accumulators, so big
#   layers are streamed in ~6 MiB channel chunks.
#   Output: (L, 1, 1) = var * sum_o (1 - arccos(cos_o)/pi).
# ----------------------------------------------------------------------------
def _conv_angle_kernel(w_ref, out_ref, fdot_acc, sq_acc, fmsq_acc, *,
                       i_total, block_i, khw, o, var):
    ii = pl.program_id(1)

    @pl.when(ii == 0)
    def _init():
        fdot_acc[...] = jnp.zeros_like(fdot_acc)
        sq_acc[...] = jnp.zeros_like(sq_acc)
        fmsq_acc[...] = jnp.zeros_like(fmsq_acc)

    w = w_ref[0].astype(jnp.float32)                 # (bI, KHW, O)
    s = jnp.sum(w, axis=1)                           # (bI, O): per-channel spatial sums
    sq = jnp.sum(w * w, axis=1)                      # (bI, O)

    if i_total % block_i != 0:                       # mask padded channels (edge block)
        ch = ii * block_i + jax.lax.broadcasted_iota(jnp.int32, (block_i, 1), 0)
        valid = ch < i_total
        s = jnp.where(valid, s, 0.0)
        sq = jnp.where(valid, sq, 0.0)

    fm = jnp.sum(s, axis=1, keepdims=True) / (o * khw)            # (bI, 1) channel means
    fdot_acc[...] += jnp.sum(fm * s, axis=0, keepdims=True)       # (1, O)
    sq_acc[...] += jnp.sum(sq, axis=0, keepdims=True)             # (1, O)
    fmsq_acc[...] += jnp.sum(fm * fm, axis=0, keepdims=True)      # (1, 1)

    @pl.when(ii == pl.num_programs(1) - 1)
    def _finalize():
        fnorm = jnp.sqrt(sq_acc[...])                             # (1, O)
        fmnorm = jnp.sqrt(khw * fmsq_acc[...])                    # (1, 1)
        cos = fdot_acc[...] / (fnorm * fmnorm + 1e-8)             # (1, O)
        cos = jnp.clip(cos, -1.0, 1.0)                            # arccos NaN guard
        sim = 1.0 - _acos(cos) / PI                               # (1, O)
        out_ref[0] = var * jnp.sum(sim, axis=1, keepdims=True)    # (1, 1)


def conv_angle_loss_group(stacked, var):
    """stacked: (L, I, KH*KW, O). Returns scalar var * sum over layers/filters."""
    l, i, khw, o = stacked.shape
    bi = max(1, min(i, _BLOCK_TARGET_BYTES // max(khw * o * 4, 1)))
    ni = pl.cdiv(i, bi)
    out = pl.pallas_call(
        functools.partial(_conv_angle_kernel, i_total=i, block_i=bi,
                          khw=khw, o=o, var=var),
        out_shape=jax.ShapeDtypeStruct((l, 1, 1), jnp.float32),
        grid=(l, ni),
        in_specs=[pl.BlockSpec((1, bi, khw, o), lambda g, ii: (g, ii, 0, 0))],
        out_specs=pl.BlockSpec((1, 1, 1), lambda g, ii: (g, 0, 0)),
        scratch_shapes=[pltpu.VMEM((1, o), jnp.float32),
                        pltpu.VMEM((1, o), jnp.float32),
                        pltpu.VMEM((1, 1), jnp.float32)],
        compiler_params=pltpu.CompilerParams(
            dimension_semantics=("parallel", "arbitrary"),
            vmem_limit_bytes=_VMEM_LIMIT),
    )(stacked)
    return jnp.sum(out)


# ----------------------------------------------------------------------------
# Kernel 3: FilterSkeleton regularizers, fully fused per layer.
#   Input layout: (L, O, KH*KW) -- ZERO-COPY reshape of the (O, KH, KW) weight
#   (no wrapper transpose; tensors are tiny so the lane-sparse KH*KW axis is
#   irrelevant).  All coefficients are baked statically; output (L, 1, 1) is
#   the layer's total contribution to the loss.
# ----------------------------------------------------------------------------
def _fs_kernel(w_ref, out_ref, *, o, var2, l2_value, gl_a, prop):
    w = w_ref[0].astype(jnp.float32)                              # (O, KHW)

    m = jnp.sum(w, axis=0, keepdims=True) / o                     # (1, KHW) mean filter
    sq = w * w
    row_sq = jnp.sum(sq, axis=1, keepdims=True)                   # (O, 1) reused
    norm = jnp.sqrt(row_sq)                                       # (O, 1)
    mnorm = jnp.sqrt(jnp.sum(m * m, axis=1, keepdims=True))       # (1, 1)
    dot = jnp.sum(w * m, axis=1, keepdims=True)                   # (O, 1)
    cos = dot / (norm * mnorm + 1e-7)
    cos = jnp.clip(cos, -1.0, 1.0)                                # arccos NaN guard
    ang = jnp.sum(1.0 - _acos(cos) / PI, axis=0, keepdims=True)   # (1, 1)

    fro = jnp.sqrt(jnp.sum(row_sq, axis=0, keepdims=True))        # (1, 1) Frobenius
    gg = jnp.sum(jnp.abs(w), axis=1, keepdims=True)               # (O, 1) per-filter L1
    group = jnp.sqrt(jnp.sum(gg * gg, axis=0, keepdims=True))     # (1, 1)
    l1 = jnp.sum(gg, axis=0, keepdims=True)                       # (1, 1)

    # TODO(synk): the stateful self.last_w history (second-call branch of the
    # PyTorch module) has no equivalent in a functional forward; only the
    # first-call (empty last_w) semantics are implemented: now_g == now_l1.
    out_ref[0] = (var2 * ang + l2_value * fro + gl_a * group
                  + prop * (l1 + l1))                             # (1, 1)


def fs_loss_group(stacked, var2, l2_value, gl_a, prop):
    """stacked: (L, O, KH*KW). Returns scalar total FS regularizer for group."""
    l, o, khw = stacked.shape
    out = pl.pallas_call(
        functools.partial(_fs_kernel, o=o, var2=var2, l2_value=l2_value,
                          gl_a=gl_a, prop=prop),
        out_shape=jax.ShapeDtypeStruct((l, 1, 1), jnp.float32),
        grid=(l,),
        in_specs=[pl.BlockSpec((1, o, khw), lambda g: (g, 0, 0))],
        out_specs=pl.BlockSpec((1, 1, 1), lambda g: (g, 0, 0)),
        compiler_params=pltpu.CompilerParams(
            dimension_semantics=("parallel",),
            vmem_limit_bytes=_VMEM_LIMIT),
    )(stacked)
    return jnp.sum(out)


# ----------------------------------------------------------------------------
# SeparateAngleLoss forward (glue combining kernel outputs)
# ----------------------------------------------------------------------------
class Args:
    var = 0.01
    var2 = 0.02
    l1_value = 0.0   # original module computes _l1_reg but never adds it
    l2_value = 0.03
    gl_a = 0.04
    prop = 0.05


def _group_by_shape(weights):
    groups = {}
    for w in weights:
        groups.setdefault(tuple(w.shape), []).append(w)
    return groups


def separate_angle_loss(output, target, conv_weights, fs_weights, args):
    """conv_weights: list of 4-D OIHW conv weights; fs_weights: list of 3-D
    FilterSkeleton weights (O, KH, KW)."""
    total = cross_entropy_pallas(output, target)

    if args.var != 0.0 and conv_weights:
        for (o, i, kh, kw), ws in _group_by_shape(conv_weights).items():
            # (O, I, KH, KW) -> (I, KH*KW, O): lane-dense over O for the kernel.
            stacked = jnp.stack(
                [jnp.transpose(w.reshape(o, i, kh * kw), (1, 2, 0)) for w in ws])
            total = total + conv_angle_loss_group(stacked, float(args.var))

    if fs_weights and (args.var2 != 0.0 or args.l2_value != 0.0
                       or args.gl_a != 0.0 or args.prop != 0.0):
        for (o, kh, kw), ws in _group_by_shape(fs_weights).items():
            # zero-copy reshape (O, KH, KW) -> (O, KH*KW), stack over layers
            stacked = jnp.stack([w.reshape(o, kh * kw) for w in ws])
            total = total + fs_loss_group(
                stacked, float(args.var2), float(args.l2_value),
                float(args.gl_a), float(args.prop))

    # NOTE: original module computes _l1_reg when args.l1_value != 0 but never
    # adds it to the returned loss; that behavior is reproduced (omitted here).
    return total


# ----------------------------------------------------------------------------
# Pure-JAX reference (mirrors the PyTorch math exactly) for verification
# ----------------------------------------------------------------------------
def reference_loss(logits, target, conv_ws, fs_ws, a):
    n = logits.shape[0]
    lse = jax.nn.logsumexp(logits, axis=1)
    picked = logits[jnp.arange(n), target]
    total = jnp.mean(lse - picked)

    for conv_w in conv_ws:
        fm = jnp.mean(conv_w, axis=(0, 2, 3))
        fmean = jnp.ones_like(conv_w) * fm[None, :, None, None]
        fnorm = jnp.sqrt(jnp.sum(conv_w ** 2, axis=(1, 2, 3)))
        fmnorm = jnp.sqrt(jnp.sum(fmean ** 2, axis=(1, 2, 3)))
        fdot = jnp.sum(conv_w * fmean, axis=(1, 2, 3))
        cosf = fdot / (fnorm * fmnorm + 1e-8)
        total = total + jnp.sum(1 - jnp.arccos(cosf) / PI) * a.var

    for fs_w in fs_ws:
        m = jnp.mean(fs_w, axis=0)
        fm2 = jnp.ones_like(fs_w) * m[None]
        n1 = jnp.sqrt(jnp.sum(fs_w ** 2, axis=(1, 2)))
        n2 = jnp.sqrt(jnp.sum(fm2 ** 2, axis=(1, 2)))
        d = jnp.sum(fs_w * fm2, axis=(1, 2))
        cosfs = d / (n1 * n2 + 1e-7)
        total = total + jnp.sum(1 - jnp.arccos(cosfs) / PI) * a.var2
        total = total + a.l2_value * jnp.sqrt(jnp.sum(fs_w ** 2))
        gg = jnp.sum(jnp.abs(fs_w), axis=(1, 2))
        total = total + a.gl_a * jnp.sqrt(jnp.sum(gg ** 2))
        now_g = jnp.sum(jnp.sqrt(gg ** 2))
        now_l1 = jnp.sum(jnp.abs(fs_w))
        total = total + a.prop * now_g + a.prop * now_l1
    return total


if __name__ == "__main__":
    key = jax.random.PRNGKey(0)
    k1, k2, k3, k4, k5, k6 = jax.random.split(key, 6)

    N, C = 8, 10
    logits = jax.random.normal(k1, (N, C), dtype=jnp.float32)
    target = jax.random.randint(k2, (N,), 0, C, dtype=jnp.int32)

    # deterministic synthetic "model" parameters (two conv layers, two FS layers
    # to exercise the grouped per-layer grids)
    conv_ws = [0.1 * jax.random.normal(k3, (8, 4, 3, 3), dtype=jnp.float32),
               0.1 * jax.random.normal(k5, (8, 4, 3, 3), dtype=jnp.float32)]
    fs_ws = [0.1 * jax.random.normal(k4, (16, 3, 3), dtype=jnp.float32) + 0.5,
             0.1 * jax.random.normal(k6, (16, 3, 3), dtype=jnp.float32) + 0.5]

    args = Args()

    loss = jax.block_until_ready(
        separate_angle_loss(logits, target, conv_ws, fs_ws, args))
    ref = jax.block_until_ready(reference_loss(logits, target, conv_ws, fs_ws, args))
    assert jnp.allclose(loss, ref, rtol=1e-4, atol=1e-4), (loss, ref)

    print("KERNEL_OK")
</pallas_src>

<mosaic_0001>
module attributes {stable_mosaic.version = 11 : i64} {
  func.func @_ce_kernel(%arg0: i32, %arg1: i32, %arg2: memref<8x10xf32, #tpu.memory_space<vmem>>, %arg3: memref<8x1xi32, #tpu.memory_space<vmem>>, %arg4: memref<1x1x1xf32, #tpu.memory_space<vmem>>) attributes {dimension_semantics = [#tpu.dimension_semantics<parallel>, #tpu.dimension_semantics<arbitrary>], iteration_bounds = array<i64: 2, 1>, scalar_prefetch = 0 : i64, scratch_operands = 0 : i64, tpu.core_type = #tpu.core_type<tc>, window_params = [{transform_indices = @transform_0, window_bounds = array<i64: 8, 10>}, {transform_indices = @transform_1, window_bounds = array<i64: 8, 1>}, {transform_indices = @transform_2, window_bounds = array<i64: 1, 1, 1>}]} {
    %c0_i32 = arith.constant 0 : i32
    %0 = arith.cmpi eq, %arg1, %c0_i32 : i32
    %1 = arith.extui %0 : i1 to i32
    %c0_i32_0 = arith.constant 0 : i32
    %2 = arith.cmpi ne, %1, %c0_i32_0 : i32
    scf.if %2 {
      %cst_18 = arith.constant 0.000000e+00 : f32
      %42 = vector.broadcast %cst_18 : f32 to vector<1x1x1xf32>
      %c0_19 = arith.constant 0 : index
      %c0_20 = arith.constant 0 : index
      %c0_21 = arith.constant 0 : index
      %43 = vector.load %arg4[%c0_19, %c0_20, %c0_21] : memref<1x1x1xf32, #tpu.memory_space<vmem>>, vector<1x1x1xf32>
      tpu.vector_store %arg4[%c0_19, %c0_20, %c0_21], %42 {strides = array<i32>} : memref<1x1x1xf32, #tpu.memory_space<vmem>>, vector<1x1x1xf32>,
    } else {
    }
    %c0 = arith.constant 0 : index
    %c0_1 = arith.constant 0 : index
    %3 = vector.load %arg2[%c0, %c0_1] : memref<8x10xf32, #tpu.memory_space<vmem>>, vector<8x10xf32>
    %c0_2 = arith.constant 0 : index
    %c0_3 = arith.constant 0 : index
    %4 = vector.load %arg3[%c0_2, %c0_3] : memref<8x1xi32, #tpu.memory_space<vmem>>, vector<8x1xi32>
    %5 = tpu.iota {dimensions = array<i32: 1>} : vector<8x10xi32>
    %6 = vector.broadcast %4 : vector<8x1xi32> to vector<8x10xi32>
    %7 = arith.cmpi eq, %5, %6 : vector<8x10xi32>
    %cst = arith.constant dense<0xFF800000> : vector<8xf32>
    %8 = vector.multi_reduction <maximumf>, %3, %cst [1] : vector<8x10xf32> to vector<8xf32>
    %9 = vector.shape_cast %8 : vector<8xf32> to vector<8x1xf32>
    %10 = vector.broadcast %9 : vector<8x1xf32> to vector<8x10xf32>
    %11 = arith.subf %3, %10 : vector<8x10xf32>
    %12 = math.exp %11 : vector<8x10xf32>
    %cst_4 = arith.constant dense<0.000000e+00> : vector<8xf32>
    %13 = vector.multi_reduction <add>, %12, %cst_4 [1] : vector<8x10xf32> to vector<8xf32>
    %14 = vector.shape_cast %13 : vector<8xf32> to vector<8x1xf32>
    %15 = math.log %14 : vector<8x1xf32>
    %cst_5 = arith.constant 0.000000e+00 : f32
    %16 = vector.broadcast %cst_5 : f32 to vector<8x10xf32>
    %17 = arith.select %7, %11, %16 : vector<8x10xi1>, vector<8x10xf32>
    %cst_6 = arith.constant dense<0.000000e+00> : vector<8xf32>
    %18 = vector.multi_reduction <add>, %17, %cst_6 [1] : vector<8x10xf32> to vector<8xf32>
    %19 = vector.shape_cast %18 : vector<8xf32> to vector<8x1xf32>
    %20 = arith.subf %15, %19 : vector<8x1xf32>
    %c1_i32 = arith.constant 1 : i32
    %21 = arith.muli %arg0, %c1_i32 : i32
    %22 = arith.addi %21, %arg1 : i32
    %c8_i32 = arith.constant 8 : i32
    %23 = arith.muli %22, %c8_i32 : i32
    %24 = tpu.iota {dimensions = array<i32: 0>} : vector<8x1xi32>
    %25 = vector.broadcast %23 : i32 to vector<8x1xi32>
    %26 = arith.addi %25, %24 : vector<8x1xi32>
    %c8_i32_7 = arith.constant 8 : i32
    %27 = vector.broadcast %c8_i32_7 : i32 to vector<8x1xi32>
    %28 = arith.cmpi slt, %26, %27 : vector<8x1xi32>
    %cst_8 = arith.constant 0.000000e+00 : f32
    %29 = vector.broadcast %cst_8 : f32 to vector<8x1xf32>
    %30 = arith.select %28, %20, %29 : vector<8x1xi1>, vector<8x1xf32>
    %c0_9 = arith.constant 0 : index
    %c0_10 = arith.constant 0 : index
    %c0_11 = arith.constant 0 : index
    %31 = vector.load %arg4[%c0_9, %c0_10, %c0_11] : memref<1x1x1xf32, #tpu.memory_space<vmem>>, vector<1x1x1xf32>
    %32 = vector.shape_cast %31 : vector<1x1x1xf32> to vector<1x1xf32>
    %cst_12 = arith.constant dense<0.000000e+00> : vector<1xf32>
    %33 = vector.multi_reduction <add>, %30, %cst_12 [0] : vector<8x1xf32> to vector<1xf32>
    %34 = vector.shape_cast %33 : vector<1xf32> to vector<1x1xf32>
    %35 = arith.addf %32, %34 : vector<1x1xf32>
    %c0_13 = arith.constant 0 : index
    %c0_14 = arith.constant 0 : index
    %c0_15 = arith.constant 0 : index
    %36 = vector.load %arg4[%c0_13, %c0_14, %c0_15] : memref<1x1x1xf32, #tpu.memory_space<vmem>>, vector<1x1x1xf32>
    %37 = vector.shape_cast %36 : vector<1x1x1xf32> to vector<1x1xf32>
    %38 = vector.shape_cast %35 : vector<1x1xf32> to vector<1x1x1xf32>
    tpu.vector_store %arg4[%c0_13, %c0_14, %c0_15], %38 {strides = array<i32>} : memref<1x1x1xf32, #tpu.memory_space<vmem>>, vector<1x1x1xf32>,
    %c0_i32_16 = arith.constant 0 : i32
    %39 = arith.cmpi eq, %arg1, %c0_i32_16 : i32
    %40 = arith.extui %39 : i1 to i32
    %c0_i32_17 = arith.constant 0 : i32
    %41 = arith.cmpi ne, %40, %c0_i32_17 : i32
    scf.if %41 {
      %c0_18 = arith.constant 0 : index
      %c0_19 = arith.constant 0 : index
      %c0_20 = arith.constant 0 : index
      %42 = vector.load %arg4[%c0_18, %c0_19, %c0_20] : memref<1x1x1xf32, #tpu.memory_space<vmem>>, vector<1x1x1xf32>
      %cst_21 = arith.constant 8.000000e+00 : f32
      %43 = vector.broadcast %cst_21 : f32 to vector<1x1x1xf32>
      %44 = arith.divf %42, %43 : vector<1x1x1xf32>
      %c0_22 = arith.constant 0 : index
      %c0_23 = arith.constant 0 : index
      %c0_24 = arith.constant 0 : index
      %45 = vector.load %arg4[%c0_22, %c0_23, %c0_24] : memref<1x1x1xf32, #tpu.memory_space<vmem>>, vector<1x1x1xf32>
      tpu.vector_store %arg4[%c0_22, %c0_23, %c0_24], %44 {strides = array<i32>} : memref<1x1x1xf32, #tpu.memory_space<vmem>>, vector<1x1x1xf32>,
    } else {
    }
    return
  }
  func.func @transform_0(%arg0: i32, %arg1: i32) -> (i32, i32) {
    %c1_i32 = arith.constant 1 : i32
    %0 = arith.muli %arg0, %c1_i32 : i32
    %1 = arith.addi %0, %arg1 : i32
    %c0_i32 = arith.constant 0 : i32
    %2 = arith.minsi %1, %c0_i32 : i32
    %c0_i32_0 = arith.constant 0 : i32
    %c0_i32_1 = arith.constant 0 : i32
    return %2, %c0_i32_0 : i32, i32
  }
  func.func @transform_1(%arg0: i32, %arg1: i32) -> (i32, i32) {
    %c1_i32 = arith.constant 1 : i32
    %0 = arith.muli %arg0, %c1_i32 : i32
    %1 = arith.addi %0, %arg1 : i32
    %c0_i32 = arith.constant 0 : i32
    %2 = arith.minsi %1, %c0_i32 : i32
    %c0_i32_0 = arith.constant 0 : i32
    %c0_i32_1 = arith.constant 0 : i32
    return %2, %c0_i32_0 : i32, i32
  }
  func.func @transform_2(%arg0: i32, %arg1: i32) -> (i32, i32, i32) {
    %c0_i32 = arith.constant 0 : i32
    %c0_i32_0 = arith.constant 0 : i32
    %c0_i32_1 = arith.constant 0 : i32
    return %arg0, %c0_i32, %c0_i32_0 : i32, i32, i32
  }
}

</mosaic_0001>

<bundles_post_ra>
// kernel: tpu_custom_call.1
= control target key start
LH: loop header
LB: loop body
LE: loop exit
PB: predicated region body
PF: predicated region fallthrough
CT: control target
= control target key end

     0   :  { %s419_s9 = smov 0   ;;  %s421_s10 = smov 0   ;;  %s468_s0 = inlined_call_operand.vmem [shape: f32[8,10], index: 0, kind: input, shape index: {}]   ;;  %s469_s1 = inlined_call_operand.vmem [shape: s32[8,1], index: 1, kind: input, shape index: {}]   ;;  %s470_s2 = inlined_call_operand.vmem [shape: f32[2,1,1], index: 2, kind: output, shape index: {}]  }
   0x1   :  { %s423_s11 = smov 0  }
   0x2 LB: > { %s24_s12 = sadd.s32 1, %s396_s10  ;;  %p335_p0 = scmp.ge.s32.totalorder %s400_s11, 1  ;;  %s400_s11 = sphi %s423_s11, %s12_s11   ;;  %s396_s10 = sphi %s421_s10, %s472_s10   ;;  %s392_s9 = sphi %s419_s9, %s471_s9  }
   0x3   : > { %p26_p1 = scmp.ge.s32.totalorder %s24_s12, 2  ;;  %p156_p2 = scmp.lt.s32.totalorder %s400_s11, 3 }
   0x5   : > { %s474_s12 = smov (%p26_p1, %s24_s12), 0  ;;  %p157_p3 = pnand %p335_p0, %p156_p2 }
   0x6   : > { %p186_p4 = scmp.lt.s32.totalorder (!%p157_p3), %s392_s9, 0  ;;  %v402_v0 = vmov (!%p157_p3), 0   ;;  %vm222_vm0 = vcmask (!%p157_p3), 80896   ;;  %v216_v7 = vlaneseq (!%p157_p3)  ;;  %p205_p5 = scmp.lt.s32.totalorder (!%p157_p3), %s392_s9, 1  ;;  %vm212_vm2 = vcmask (!%p157_p3), 0  }
   0x7   : > { %160 = sbr.rel (%p157_p3) target bundleno = 362 (0x16a), region = 28  ;;  %373 = vset.pattern.permute.xlu0 (!%p157_p3), %v402_v0  ;;  %v403_v14 = vmov (!%p157_p3), 0.0   ;;  %s344_s25 = sshll.u32 (!%p157_p3), %s392_s9, 3 }
   0x8   : > { %v217_v8 = vand.u32 (!%p157_p3), 127, %v216_v7  ;;  %v242_v16 = vshrl.u32 (!%p157_p3), %v216_v7, 7  ;;  %v243_v17 = vstv (!%p157_p3), %s344_s25 }
   0xa   : > { %v244_v18 = vadd.s32 (!%p157_p3), %v243_v17, %v242_v16 }
   0xc   : > { %vm245_vm3 = vcmp.lt.s32.totalorder (!%p157_p3), %v244_v18, 8 }
   0xe   : > { %s187_s13 = scalar_select %p186_p4, %s392_s9, 0 }
   0xf   : > { %s206_s21 = scalar_select %p205_p5, %s392_s9, 1 }
  0x10   : > { %s476_s13 = smov (!%p186_p4, %s187_s13), 0 }
  0x11   : > { %s339_s14 = sshll.u32 %s476_s13, 3  ;;  %s207_s24 = scalar_lea.vmem %s470_s2, %s206_s21 }
  0x12   : > { %s191_s17 = scalar_lea.vmem %s468_s0, %s339_s14  ;;  %s201_s20 = scalar_lea.vmem %s469_s1, %s339_s14  ;;  %213 = vst.msk [vmem:[%s207_s24] sm:$0x1] %vm212_vm2, %v403_v14 }
  0x13   : > { %v214_v1 = vld [vmem:[%s191_s17] sm:$0xff] }
  0x14   : > { %v223_v2 = vsel %vm222_vm0, %v214_v1, -inf  ;;  %v215_v3 = vld [vmem:[%s201_s20] sm:$0xff] }
  0x15   : > { %224 = vmax.xlane.f32.xlu0 %v223_v2 }
  0x19   : > { %v247_v29 = vld [vmem:[%s207_s24] sm:$0x1] }
  0x2b   : > { %219 = vperm.xlu0 %373, %v215_v3  }
  0xa2   : > { %v225_v4 = vpop.xlane.xlu0 %224 }
  0xa3   : > { %v226_v5 = vsub.f32 %v214_v1, %v225_v4 }
  0xa5   : > { %v227_v6 = vmul.f32 1.442695, %v226_v5 }
  0xa7   : > { %374 = vpow2.f32 %v227_v6 }
  0xaa   : > { %v220_v9 = vpop.permute.xlu0 %219 }
  0xab   : > { %vm221_vm1 = vcmp.eq.s32.totalorder %v217_v8, %v220_v9 }
  0xac   : > { %v234_v12 = vsel %vm221_vm1, %v226_v5, 0.0 }
  0xad   : > { %v235_v13 = vsel %vm222_vm0, %v234_v12, 0.0 }
  0xb1   : > { %v375_v10 = vpop.eup %374 }
  0xb2   : > { %v229_v11 = vsel %vm222_vm0, %v375_v10, 0.0 }
  0xb3   : > { %230 = vadd.xlane.f32.xlu1 %v229_v11 }
  0xb7   : > { %236 = vadd.xlane.f32.xlu1 %v235_v13 }
 0x140   : > { %v231_v15 = vpop.xlane.xlu1 %230 }
 0x141   : > { %376 = vlog2.f32 %v231_v15 }
 0x144   : > { %v237_v21 = vpop.xlane.xlu1 %236 }
 0x14b   : > { %v377_v19 = vpop.eup %376 }
 0x14c   : > { %v233_v20 = vmul.f32 0.6931472, %v377_v19 }
 0x14e   : > { %v238_v22 = vsub.f32 %v233_v20, %v237_v21 }
 0x150   : > { %v246_v23 = vsel %vm245_vm3, %v238_v22, 0.0 }
 0x151   : > { %v248_v24 = vrot.slane %v246_v23, 4 }
 0x153   : > { %v249_v25 = vadd.f32 %v248_v24, %v246_v23 }
 0x155   : > { %v250_v26 = vrot.slane %v249_v25, 2 }
 0x157   : > { %v251_v27 = vadd.f32 %v250_v26, %v249_v25 }
 0x159   : > { %v252_v28 = vrot.slane %v251_v27, 1 }
 0x15b   : > { %v253_v30 = vadd.f32 %v252_v28, %v251_v27 }
 0x15d   : > { %v254_v31 = vadd.f32 %v253_v30, %v247_v29 }
 0x15f   : > { %256 = vst.msk [vmem:[%s207_s24] sm:$0x1] %vm212_vm2, %v254_v31 }
 0x166   : > { %v260_v32 = vld [vmem:[%s207_s24] sm:$0x1] }
 0x167   : > { %v262_v33 = vmul.f32 0.125, %v260_v32 }
 0x169   : > { %263 = vst.msk [vmem:[%s207_s24] sm:$0x1] %vm212_vm2, %v262_v33 }
 0x16a PF: > { %s12_s11 = sadd.s32 1, %s400_s11   ;;  %s471_s9 = smov %s396_s10 }
 0x16b   : > { %p9_p6 = scmp.ge.s32.totalorder %s12_s11, 4   ;;  %s472_s10 = smov %s474_s12 }
 0x16d   :  { %11 = sbr.rel (!%p9_p6) target bundleno = 2 (0x2), region = 69 }

</bundles_post_ra>
